<compile_context>
chip_gen: v7x
topology: tpu7x:2x2x1
jax: 0.10.0
libtpu: 0.0.40
codegen_flags: <defaults>
</compile_context>

<pallas_src>
import jax
import jax.numpy as jnp
from jax.experimental import pallas as pl
from jax.experimental.pallas import tpu as pltpu

_LANE = 128
_SMALL_FAST_PATH_BYTES = 256 * 1024   # below this, plain XLA max is cheaper
_MIN_SPLIT_BYTES = 1 * 1024 * 1024    # above this, force >=2 grid steps (v7x megacore)


def _pick_block_bytes():
    """Per-generation target block size (HBM-BW vs. per-grid-step overhead)."""
    try:
        kind = jax.devices()[0].device_kind.lower()
    except Exception:  # pragma: no cover - defensive; default is safe everywhere
        kind = ""
    if "v5" in kind:
        return 2 * 1024 * 1024   # ~0.82 TB/s: 2 MiB steps already <10% overhead
    if "v6" in kind:
        return 4 * 1024 * 1024   # ~1.4 TB/s: 4 MiB halves per-step overhead
    if "7" in kind:
        return 8 * 1024 * 1024   # ~3.2 TB/s/TC: need big steps to amortize 0.35us
    return 4 * 1024 * 1024


def _relu_kernel(x_ref, o_ref):
    # Elementwise activation on the whole VMEM tile (VPU op).
    zero = jnp.zeros((), x_ref.dtype)
    o_ref[...] = jnp.maximum(x_ref[...], zero)


def _pallas_relu_slab(slab):
    """ReLU on a lane-dense (rows, 128) slab via a tiled, pipelined kernel."""
    rows, lane = slab.shape
    dtype = slab.dtype
    itemsize = jnp.dtype(dtype).itemsize
    sublane = max(8, 32 // itemsize)  # 8 for f32, 16 for bf16, 32 for int8

    slab_bytes = rows * lane * itemsize
    block_bytes = _pick_block_bytes()
    target_rows = max(sublane, block_bytes // (lane * itemsize))

    # Ensure at least two grid steps for medium/large tensors so v7x can shard
    # them across both TensorCores ("parallel" is ~neutral on v5e/v6e).
    if slab_bytes > _MIN_SPLIT_BYTES and rows > 2 * sublane:
        half = -(-rows // 2)
        half = -(-half // sublane) * sublane
        target_rows = min(target_rows, half)

    tile_rows = min(target_rows, rows)
    if tile_rows < rows:
        # Partial blocks must satisfy the (8,128) divisibility rule; full-extent
        # blocks are exempt.
        tile_rows = max(sublane, (tile_rows // sublane) * sublane)
    grid = (pl.cdiv(rows, tile_rows),)

    tile_bytes = tile_rows * lane * itemsize
    # 2 inputs + 2 output pipeline buffers, plus slack; clamp to safe bounds
    # (v5e default scoped 16 MiB; v7x physical 64 MiB per TC).
    vmem_limit = max(16 << 20, min(48 << 20, 4 * tile_bytes + (4 << 20)))

    n = rows * lane
    cost = pl.CostEstimate(
        flops=n,
        transcendentals=0,
        bytes_accessed=2 * n * itemsize,
    )

    return pl.pallas_call(
        _relu_kernel,
        out_shape=jax.ShapeDtypeStruct((rows, lane), dtype),
        grid_spec=pltpu.PrefetchScalarGridSpec(
            num_scalar_prefetch=0,
            grid=grid,
            in_specs=[pl.BlockSpec((tile_rows, lane), lambda i: (i, 0))],
            out_specs=pl.BlockSpec((tile_rows, lane), lambda i: (i, 0)),
        ),
        compiler_params=pltpu.CompilerParams(
            dimension_semantics=("parallel",),  # megacore sharding on v7x
            vmem_limit_bytes=int(vmem_limit),
        ),
        cost_estimate=cost,
    )(slab)


def pallas_relu(x, *, min_pallas_bytes=_SMALL_FAST_PATH_BYTES):
    """Elementwise ReLU; streams through a Pallas TPU kernel for large tensors.

    Small tensors (< min_pallas_bytes) use plain jnp.maximum so they keep
    fusing with neighboring XLA ops instead of paying custom-call overhead.
    """
    orig_shape = x.shape
    dtype = x.dtype
    n = x.size
    zero = jnp.zeros((), dtype)
    if n == 0:
        return x

    itemsize = jnp.dtype(dtype).itemsize
    if n * itemsize < min_pallas_bytes:
        return jnp.maximum(x, zero)

    flat = x.reshape(-1)
    aligned = (n // _LANE) * _LANE
    if aligned == 0:
        # Fewer than 128 elements total: not worth a kernel launch.
        return jnp.maximum(x, zero)

    rows = aligned // _LANE
    slab = flat[:aligned].reshape(rows, _LANE) if aligned < n else flat.reshape(rows, _LANE)

    out_slab = _pallas_relu_slab(slab)
    out_main = out_slab.reshape(-1)

    if aligned < n:
        # Ragged (<128-element) tail handled outside the kernel: avoids the
        # old pad + slice round trip (two extra full passes over HBM).
        tail = jnp.maximum(flat[aligned:], zero)
        out_flat = jnp.concatenate([out_main, tail])
    else:
        out_flat = out_main
    return out_flat.reshape(orig_shape)


def tree_activation_forward(x):
    """TreeActivation.forward: apply activation to x[0], pass x[1] through."""
    x0, x1 = x
    return (pallas_relu(x0), x1)


if __name__ == "__main__":
    key = jax.random.PRNGKey(0)
    k0, k1, k2, k3 = jax.random.split(key, 4)

    # --- primary demo: small NCHW tuple input, module semantics ---
    x0 = jax.random.normal(k0, (2, 4, 16, 16), dtype=jnp.float32)
    x1 = jax.random.normal(k1, (2, 4, 16, 16), dtype=jnp.float32)
    out0, out1 = tree_activation_forward((x0, x1))
    jax.block_until_ready(out0)
    jax.block_until_ready(out1)
    assert out0.shape == x0.shape and out0.dtype == x0.dtype
    assert jnp.array_equal(out0, jnp.maximum(x0, 0.0)), "activation branch mismatch"
    assert jnp.array_equal(out1, x1), "pass-through branch mismatch"

    # --- force the Pallas kernel on the small demo shape (bypass fast path) ---
    out0_k = pallas_relu(x0, min_pallas_bytes=0)
    jax.block_until_ready(out0_k)
    assert jnp.array_equal(out0_k, jnp.maximum(x0, 0.0)), "forced-kernel mismatch"

    # --- multi-block tiled path (>=2 grid steps, pipelined DMA) ---
    xb = jax.random.normal(k2, (8, 32, 64, 64), dtype=jnp.float32)  # 4 MiB slab
    outb = pallas_relu(xb)
    jax.block_until_ready(outb)
    assert jnp.array_equal(outb, jnp.maximum(xb, 0.0)), "tiled-path mismatch"

    # --- ragged-tail path (size % 128 != 0), forced through the kernel ---
    xr = jax.random.normal(k3, (1000, 13), dtype=jnp.float32)
    outr = pallas_relu(xr, min_pallas_bytes=0)
    jax.block_until_ready(outr)
    assert jnp.array_equal(outr, jnp.maximum(xr, 0.0)), "ragged-path mismatch"

    print("KERNEL_OK")
</pallas_src>

<mosaic_0001>
module attributes {stable_mosaic.version = 11 : i64} {
  func.func @_relu_kernel(%arg0: i32, %arg1: memref<16x128xf32, #tpu.memory_space<vmem>>, %arg2: memref<16x128xf32, #tpu.memory_space<vmem>>) attributes {dimension_semantics = [#tpu.dimension_semantics<parallel>], iteration_bounds = array<i64: 1>, scalar_prefetch = 0 : i64, scratch_operands = 0 : i64, tpu.core_type = #tpu.core_type<tc>, window_params = [{transform_indices = @transform_0, window_bounds = array<i64: 16, 128>}, {transform_indices = @transform_1, window_bounds = array<i64: 16, 128>}]} {
    %c0 = arith.constant 0 : index
    %c0_0 = arith.constant 0 : index
    %0 = vector.load %arg1[%c0, %c0_0] : memref<16x128xf32, #tpu.memory_space<vmem>>, vector<16x128xf32>
    %cst = arith.constant 0.000000e+00 : f32
    %1 = vector.broadcast %cst : f32 to vector<16x128xf32>
    %2 = arith.maximumf %0, %1 : vector<16x128xf32>
    %c0_1 = arith.constant 0 : index
    %c0_2 = arith.constant 0 : index
    %3 = vector.load %arg2[%c0_1, %c0_2] : memref<16x128xf32, #tpu.memory_space<vmem>>, vector<16x128xf32>
    tpu.vector_store %arg2[%c0_1, %c0_2], %2 {strides = array<i32>} : memref<16x128xf32, #tpu.memory_space<vmem>>, vector<16x128xf32>,
    return
  }
  func.func @transform_0(%arg0: i32) -> (i32, i32) {
    %c0_i32 = arith.constant 0 : i32
    %c0_i32_0 = arith.constant 0 : i32
    return %arg0, %c0_i32 : i32, i32
  }
  func.func @transform_1(%arg0: i32) -> (i32, i32) {
    %c0_i32 = arith.constant 0 : i32
    %c0_i32_0 = arith.constant 0 : i32
    return %arg0, %c0_i32 : i32, i32
  }
}

</mosaic_0001>

<bundles_post_ra>
// kernel: tpu_custom_call.1
= control target key start
LH: loop header
LB: loop body
LE: loop exit
PB: predicated region body
PF: predicated region fallthrough
CT: control target
= control target key end

     0   :  { %6 = vsyncpa [#allocation3], 0  ;;  %s136_s0 = inlined_call_operand.hbm [shape: f32[16,128], index: 0, kind: input, shape index: {}]   ;;  %s137_s1 = inlined_call_operand.hbm [shape: f32[16,128], index: 1, kind: output, shape index: {}]  }
   0x1   :  { %7 = vsyncpa [#allocation4], 0  ;;  %s98_s6 = smov [#allocation2]   ;;  %s50_s10 = scalar_lea.hbm %s136_s0, 256 }
   0x2   :  { %s13_s7 = sshll.u32 %s98_s6, 4  ;;  %p51_p0 = scmp.ne.s32.totalorder %s136_s0, %s50_s10  ;;  %s14_s7 = int_to_ptr.vmem [resolvable:$true] %s13_s7 }
   0x3   :  { %p54_p1 = scmp.lt.u32.totalorder %s50_s10, %s136_s0 }
   0x5   :  { %p56_p2 = pnand %p54_p1, %p51_p0 }
   0x7   :  { %59 = shalt.err (!%p56_p2)
}
   0x8   :  { %s60_s15 = scalar_lea.vmem %s14_s7, 256  ;;  %p65_p4 = scmp.lt.s32.totalorder %s14_s7, %s14_s7 }
   0x9   :  { %p61_p3 = scmp.ne.s32.totalorder %s14_s7, %s60_s15  ;;  %p66_p5 = scmp.lt.s32.totalorder %s60_s15, %s60_s15 }
   0xb   :  { %p67_p6 = por %p66_p5, %p65_p4 }
   0xd   :  { %p68_p7 = pnand %p67_p6, %p61_p3 }
   0xf   :  { %71 = shalt.err (!%p68_p7)
}
  0x10   :  { %s99_s16 = smov 128   ;;  %s100_s17 = smov 8  }
  0x11   :  { %19 = dma.hbm_to_vmem [thread:$0]  %s136_s0, 256, %s14_s7, [#allocation3], %s99_s16, %s99_s16, %s100_s17  }
  0x12   :  { %94 = dma.done.wait [#allocation3], 256  }
  0x13   :  { %95 = vsyncadd [#allocation3], 4294967040  ;;  %s101_s20 = smov [#allocation5]   ;;  %v23_v0 = vld [vmem:[#allocation2] sm:$0xff]  ;;  %v24_v1 = vld [vmem:[#allocation2 + $0x8] sm:$0xff] }
  0x14   :  { %s34_s21 = sshll.u32 %s101_s20, 4  ;;  %v25_v2 = vmax.f32 %v23_v0, 0.0  ;;  %v26_v3 = vmax.f32 %v24_v1, 0.0  ;;  %s35_s21 = int_to_ptr.vmem [resolvable:$true] %s34_s21 }
  0x15   :  { %s72_s22 = scalar_lea.vmem %s35_s21, 256  ;;  %p77_p9 = scmp.lt.s32.totalorder %s35_s21, %s35_s21 }
  0x16   :  { %27 = vst [vmem:[#allocation5] sm:$0xff] %v25_v2  ;;  %28 = vst [vmem:[#allocation5 + $0x8] sm:$0xff] %v26_v3  ;;  %p73_p8 = scmp.ne.s32.totalorder %s35_s21, %s72_s22  ;;  %p78_p10 = scmp.lt.s32.totalorder %s72_s22, %s72_s22 }
  0x18   :  { %p79_p11 = por %p78_p10, %p77_p9 }
  0x1a   :  { %p80_p12 = pnand %p79_p11, %p73_p8 }
  0x1c   :  { %83 = shalt.err (!%p80_p12)
}
  0x1d   :  { %s84_s24 = scalar_lea.hbm %s137_s1, 256 }
  0x1e   :  { %p85_p13 = scmp.ne.s32.totalorder %s137_s1, %s84_s24  ;;  %p88_p0 = scmp.lt.u32.totalorder %s84_s24, %s137_s1 }
  0x20   :  { %p90_p1 = pnand %p88_p0, %p85_p13 }
  0x22   :  { %93 = shalt.err (!%p90_p1)
}
  0x23   :  { %40 = dma.vmem_to_hbm [thread:$0]  %s35_s21, 256, %s137_s1, [#allocation4], %s99_s16, %s99_s16, %s100_s17  }
  0x24   :  { %96 = dma.done.wait [#allocation4], 256  }
  0x25   :  { %97 = vsyncadd [#allocation4], 4294967040 }
  0x26   :  { %44 = vsyncpa [#allocation3], 1 }
  0x27   :  { %45 = vsyncpa [#allocation4], 1 }

</bundles_post_ra>
